<compile_context>
chip_gen: v5e
topology: v5e:2x2
jax: 0.10.0
libtpu: 0.0.40
codegen_flags: <defaults>
</compile_context>

<pallas_src>
import jax
import jax.numpy as jnp
from jax.experimental import pallas as pl
from jax.experimental.pallas import tpu as pltpu


def _linear_kernel(x_ref, w_ref, b_ref, o_ref):
    # x_ref: (TM, F*K)  w_ref: (F*K, F*N)  b_ref: (1, F*N)  o_ref: (TM, F*N)
    # HBM-bound layer: the tiny matmul is nowhere near the bottleneck, so a
    # plain MXU dot on the block-diagonal folded weight is fine.
    acc = jnp.dot(x_ref[...], w_ref[...], preferred_element_type=jnp.float32)
    o_ref[...] = (acc + b_ref[...].astype(jnp.float32)).astype(o_ref.dtype)


def _round_up(a, b):
    return ((a + b - 1) // b) * b


def _round_down(a, b):
    return (a // b) * b


def _choose_fold(m, n):
    """Largest power-of-two F such that F*N reaches 128 lanes (lane-dense
    stores) AND F divides M (so the wrapper reshapes stay free views — no
    pad, no slice). Falls back to 1 if no such F exists."""
    if n >= 128:
        return 1
    f = 1
    while f * n < 128:
        f *= 2
    while f > 1 and m % f != 0:
        f //= 2
    return f


def input_embedding(x, weight, bias, *, tm_max=8192,
                    vmem_budget_bytes=12 * 1024 * 1024):
    """Pallas equivalent of Input.forward.

    x:      (..., in_channels)
    weight: (units, in_channels)   -- torch nn.Linear layout
    bias:   (units,)
    returns (..., units)
    """
    in_channels = x.shape[-1]
    units = weight.shape[0]
    assert weight.shape[1] == in_channels
    lead = x.shape[:-1]

    x2d = x.reshape(-1, in_channels)            # (M, K)
    M = x2d.shape[0]

    # --- lane-fold: (M, K) -> (M/F, F*K), weight -> block-diag (F*K, F*N) ---
    F = _choose_fold(M, units)
    Mf = M // F
    Kf = F * in_channels
    Nf = F * units
    x_fold = x2d.reshape(Mf, Kf)                # free row-major view

    w_dtype = weight.dtype
    # Block-diagonal folded weight + tiled bias.  Tiny (F^2*K*N elements);
    # in a real model precompute this once outside the hot path.
    w_block = jnp.kron(jnp.eye(F, dtype=w_dtype), weight.T)   # (F*K, F*N)
    b2d = jnp.tile(bias, F).reshape(1, Nf)                     # (1, F*N)

    # --- tile size -----------------------------------------------------------
    # Sublane packing: 16 rows for bf16, 8 for 32-bit dtypes.
    sub = 16 if x_fold.dtype == jnp.bfloat16 else 8
    itemsize = jnp.dtype(x_fold.dtype).itemsize

    # Cap by a double-buffered VMEM budget (x tile + out tile, 2 buffers each)
    # so we never exceed the scoped VMEM default on any chip (incl. v7x).
    row_bytes = (Kf + Nf) * itemsize * 2
    tm_vmem = max(sub, _round_down(vmem_budget_bytes // row_bytes, sub))

    # v7x megacore: prefer >= 2 grid steps so the "parallel" axis can shard
    # across both TensorCores; otherwise just take the biggest tile allowed.
    tm = min(tm_max, _round_up(pl.cdiv(Mf, 2), sub), tm_vmem)
    tm = max(tm, sub)
    if tm >= Mf:
        tm = Mf          # single block; block dims == array dims (always legal)
    grid = (pl.cdiv(Mf, tm),)   # partial last block handled by Pallas masking

    cost = pl.CostEstimate(
        flops=2 * M * in_channels * units,
        transcendentals=0,
        bytes_accessed=(M * in_channels * itemsize
                        + M * units * jnp.dtype(x.dtype).itemsize
                        + w_block.size * jnp.dtype(w_block.dtype).itemsize
                        + b2d.size * jnp.dtype(b2d.dtype).itemsize),
    )

    out = pl.pallas_call(
        _linear_kernel,
        out_shape=jax.ShapeDtypeStruct((Mf, Nf), x.dtype),
        grid_spec=pl.GridSpec(
            grid=grid,
            in_specs=[
                # x: one (tm, F*K) tile per grid step.
                pl.BlockSpec((tm, Kf), lambda i: (i, 0)),
                # folded weight / bias: full-array blocks, VMEM-resident.
                pl.BlockSpec((Kf, Nf), lambda i: (0, 0)),
                pl.BlockSpec((1, Nf), lambda i: (0, 0)),
            ],
            out_specs=pl.BlockSpec((tm, Nf), lambda i: (i, 0)),
        ),
        compiler_params=pltpu.CompilerParams(
            dimension_semantics=("parallel",)),
        cost_estimate=cost,
    )(x_fold, w_block, b2d)

    # (Mf, F*N) -> (..., N): free row-major view, no extra memory pass.
    return out.reshape(*lead, units)


if __name__ == "__main__":
    # Module config: Input(input_embeding_units=32, inchannels=4)
    in_channels = 4
    units = 32
    batch, seq = 2, 8

    key = jax.random.PRNGKey(0)
    kx, kw, kb, kx2, kx3 = jax.random.split(key, 5)

    # Deterministic synthetic parameters (same shapes as nn.Linear(4, 32)).
    weight = jax.random.normal(kw, (units, in_channels), dtype=jnp.float32) * 0.1
    bias = jax.random.normal(kb, (units,), dtype=jnp.float32) * 0.1

    # Shipped (small) shape: F=4 lane-fold -> one 128-lane-wide block.
    x = jax.random.normal(kx, (batch, seq, in_channels), dtype=jnp.float32)
    y = input_embedding(x, weight, bias)
    jax.block_until_ready(y)
    y_ref = x @ weight.T + bias
    assert y.shape == (batch, seq, units)
    assert jnp.allclose(y, y_ref, atol=1e-5), "mismatch vs reference (small)"

    # Larger shape: exercises M-tiling with a partial last block (no pad/slice).
    x_big = jax.random.normal(kx2, (4, 300, in_channels), dtype=jnp.float32)
    y_big = input_embedding(x_big, weight, bias)
    jax.block_until_ready(y_big)
    y_big_ref = x_big @ weight.T + bias
    assert y_big.shape == (4, 300, units)
    assert jnp.allclose(y_big, y_big_ref, atol=1e-5), "mismatch vs reference (tiled)"

    # Odd row count: fold falls back to F=1 (masked 32-lane stores) but still
    # no pad/slice and still correct, including the partial last block.
    x_odd = jax.random.normal(kx3, (1, 17, in_channels), dtype=jnp.float32)
    y_odd = input_embedding(x_odd, weight, bias)
    jax.block_until_ready(y_odd)
    y_odd_ref = x_odd @ weight.T + bias
    assert y_odd.shape == (1, 17, units)
    assert jnp.allclose(y_odd, y_odd_ref, atol=1e-5), "mismatch vs reference (odd M)"

    print("KERNEL_OK")
</pallas_src>

<mosaic_0001>
module attributes {stable_mosaic.version = 11 : i64} {
  func.func @_linear_kernel(%arg0: i32, %arg1: memref<4x16xf32, #tpu.memory_space<vmem>>, %arg2: memref<16x128xf32, #tpu.memory_space<vmem>>, %arg3: memref<1x128xf32, #tpu.memory_space<vmem>>, %arg4: memref<4x128xf32, #tpu.memory_space<vmem>>) attributes {dimension_semantics = [#tpu.dimension_semantics<parallel>], iteration_bounds = array<i64: 1>, scalar_prefetch = 0 : i64, scratch_operands = 0 : i64, tpu.core_type = #tpu.core_type<tc>, window_params = [{transform_indices = @transform_0, window_bounds = array<i64: 4, 16>}, {pipeline_mode = #tpu.pipeline_mode<synchronous>, transform_indices = @transform_1, window_bounds = array<i64: 16, 128>}, {pipeline_mode = #tpu.pipeline_mode<synchronous>, transform_indices = @transform_2, window_bounds = array<i64: 1, 128>}, {transform_indices = @transform_3, window_bounds = array<i64: 4, 128>}]} {
    %c0 = arith.constant 0 : index
    %c0_0 = arith.constant 0 : index
    %0 = vector.load %arg1[%c0, %c0_0] : memref<4x16xf32, #tpu.memory_space<vmem>>, vector<4x16xf32>
    %c0_1 = arith.constant 0 : index
    %c0_2 = arith.constant 0 : index
    %1 = vector.load %arg2[%c0_1, %c0_2] : memref<16x128xf32, #tpu.memory_space<vmem>>, vector<16x128xf32>
    %cst = arith.constant dense<0.000000e+00> : vector<4x128xf32>
    %2 = tpu.matmul %0, %1, %cst {dimension_numbers = #tpu.dot_dimension_numbers<[1], [0], [0], [1], [0, 0, 1, 1], [], []>} : vector<4x16xf32>, vector<16x128xf32>, vector<4x128xf32> -> vector<4x128xf32>
    %c0_3 = arith.constant 0 : index
    %c0_4 = arith.constant 0 : index
    %3 = vector.load %arg3[%c0_3, %c0_4] : memref<1x128xf32, #tpu.memory_space<vmem>>, vector<1x128xf32>
    %4 = vector.broadcast %3 : vector<1x128xf32> to vector<4x128xf32>
    %5 = arith.addf %2, %4 : vector<4x128xf32>
    %c0_5 = arith.constant 0 : index
    %c0_6 = arith.constant 0 : index
    %6 = vector.load %arg4[%c0_5, %c0_6] : memref<4x128xf32, #tpu.memory_space<vmem>>, vector<4x128xf32>
    tpu.vector_store %arg4[%c0_5, %c0_6], %5 {strides = array<i32>} : memref<4x128xf32, #tpu.memory_space<vmem>>, vector<4x128xf32>,
    return
  }
  func.func @transform_0(%arg0: i32) -> (i32, i32) {
    %c0_i32 = arith.constant 0 : i32
    %c0_i32_0 = arith.constant 0 : i32
    return %arg0, %c0_i32 : i32, i32
  }
  func.func @transform_1(%arg0: i32) -> (i32, i32) {
    %c0_i32 = arith.constant 0 : i32
    %c0_i32_0 = arith.constant 0 : i32
    %c0_i32_1 = arith.constant 0 : i32
    return %c0_i32, %c0_i32_0 : i32, i32
  }
  func.func @transform_2(%arg0: i32) -> (i32, i32) {
    %c0_i32 = arith.constant 0 : i32
    %c0_i32_0 = arith.constant 0 : i32
    %c0_i32_1 = arith.constant 0 : i32
    return %c0_i32, %c0_i32_0 : i32, i32
  }
  func.func @transform_3(%arg0: i32) -> (i32, i32) {
    %c0_i32 = arith.constant 0 : i32
    %c0_i32_0 = arith.constant 0 : i32
    return %arg0, %c0_i32 : i32, i32
  }
}

</mosaic_0001>

<bundles_post_ra>
// kernel: tpu_custom_call.1
= control target key start
LH: loop header
LB: loop body
LE: loop exit
PB: predicated region body
PF: predicated region fallthrough
CT: control target
= control target key end

     0   :  { %8 = vsyncpa [#allocation3], 0  ;;  %s217_s0 = inlined_call_operand.hbm [shape: f32[4,16], index: 0, kind: input, shape index: {}]   ;;  %s218_s1 = inlined_call_operand.hbm [shape: f32[16,128], index: 1, kind: input, shape index: {}]   ;;  %s219_s2 = inlined_call_operand.vmem [shape: f32[1,128], index: 2, kind: input, shape index: {}]   ;;  %s220_s3 = inlined_call_operand.hbm [shape: f32[4,128], index: 3, kind: output, shape index: {}]  }
   0x1   :  { %9 = vsyncpa [#allocation6], 0 }
   0x2   :  { %10 = vsyncpa [#allocation4], 0  ;;  %s16_s14 = sshll.u32 %s217_s0, 4  ;;  %s180_s15 = smov [#allocation2]   ;;  %s17_s14 = int_to_ptr.hbm [resolvable:$true] %s16_s14 }
   0x3   :  { %s18_s16 = sshll.u32 %s180_s15, 4  ;;  %s26_s19 = sshll.u32 %s218_s1, 4  ;;  %s19_s16 = int_to_ptr.vmem [resolvable:$true] %s18_s16  ;;  %s27_s19 = int_to_ptr.hbm [resolvable:$true] %s26_s19 }
   0x4   :  { %21 = dma.hbm_to_vmem [thread:$0]  %s17_s14, 64, %s19_s16, [#allocation3]  }
   0x5   :  { %s181_s20 = smov [#allocation5]   ;;  %s182_s22 = smov 128  }
   0x6   :  { %s28_s21 = sshll.u32 %s181_s20, 4  ;;  %s183_s23 = smov 8   ;;  %s29_s21 = int_to_ptr.vmem [resolvable:$true] %s28_s21 }
   0x7   :  { %34 = dma.hbm_to_vmem [thread:$0]  %s27_s19, 256, %s29_s21, [#allocation6], %s182_s22, %s182_s22, %s183_s23  }
   0x8   :  { %174 = dma.done.wait [#allocation3], 64  }
   0x9   :  { %175 = vsyncadd [#allocation3], 4294967232 }
   0xa   :  { %176 = dma.done.wait [#allocation6], 256  }
   0xb   :  { %177 = vsyncadd [#allocation6], 4294967040  ;;  %v47_v0 = vld [vmem:[#allocation5 + $0x8] sm:$0xff]  ;;  %v46_v1 = vld [vmem:[#allocation5] sm:$0xff]  ;;  %vm52_vm0 = vcmask 130048   ;;  %s184_s24 = smov [#allocation7]  }
   0xc   :  { %70 = vmatpush.msra.mxu0 %v47_v0  ;;  %v45_v2 = vld [vmem:[#allocation2] sm:$0xf]  ;;  %s82_s25 = sshll.u32 %s184_s24, 4  ;;  %s84_s28 = sshll.u32 %s220_s3, 4  ;;  %s83_s25 = int_to_ptr.vmem [resolvable:$true] %s82_s25  ;;  %s85_s28 = int_to_ptr.hbm [resolvable:$true] %s84_s28 }
   0xd   :  { %v101_v3 = vld [vmem:[%s219_s2] ss:$0 sm:$0xff] }
   0xe   :  { %71 = vmatpush.msra.mxu0 %v46_v1 }
   0xf   :  { %95 = vmatmul.msk.f32.vlgmr.msra.gmra.mxu0 %vm52_vm0, %v45_v2 }
  0x8c   :  { %v73_v4 = vpop.f32.mrf.mxu0 }
  0x8d   :  { %v74_v5 = vadd.f32 %v101_v3, %v73_v4 }
  0x8f   :  { %76 = vst [vmem:[#allocation7] sm:$0xf] %v74_v5 }
  0x90   :  { %87 = dma.vmem_to_hbm [thread:$0]  %s83_s25, 64, %s85_s28, [#allocation4]  }
  0x91   :  { %178 = dma.done.wait [#allocation4], 64  }
  0x92   :  { %179 = vsyncadd [#allocation4], 4294967232 }
  0x93   :  { %92 = vsyncpa [#allocation3], 1 }
  0x94   :  { %93 = vsyncpa [#allocation6], 1 }
  0x95   :  { %94 = vsyncpa [#allocation4], 1 }

</bundles_post_ra>
